<compile_context>
chip_gen: v5e
topology: v5e:2x2
jax: 0.10.0
libtpu: 0.0.40
codegen_flags: <defaults>
</compile_context>

<pallas_src>
import jax
import jax.numpy as jnp
from jax import lax
from jax.experimental import pallas as pl
from jax.experimental.pallas import tpu as pltpu

EPS = 1e-8


def _round_up(v, m):
    return (v + m - 1) // m * m


def _vmem_limit_bytes():
    cap = 64 * 1024 * 1024
    try:
        info = pltpu.get_tpu_info()
        cap = int(getattr(info, "vmem_capacity_bytes", cap))
    except Exception:
        pass
    # Leave headroom for compiler-internal scratch; cap at 100 MiB on 128 MiB
    # parts (v5e/v6e), ~48 MiB on v7x.
    return min(100 * 1024 * 1024, (cap * 3) // 4)


def conv_block_pallas(x, params, *, kernel_size, dilation,
                      matmul_dtype=jnp.float32):
    """Fused ConvBlock forward. Returns (residual, skip), each (N, B, T)."""
    # TODO(synk): only the causal=True, residual-enabled branch is implemented
    # (module defaults; matches the reference forward()).
    # TODO(synk): for very long T add a T-tiled 'arbitrary' grid axis with
    # two-pass GroupNorm stats and a pad-wide halo for the dilated conv; here
    # each sample's full (Hp, Tp) working set stays resident in VMEM.
    (w1, b1, a1, g1, be1, w2, b2, w3, b3, wres, bres, wskip, bskip) = params
    N, B, T = x.shape
    H = w1.shape[0]
    P = kernel_size
    dil = dilation
    pad_amt = (P - 1) * dil

    f32 = jnp.float32
    mm_dtype = jnp.dtype(matmul_dtype)       # bf16 recommended on v5e/v6e/v7x MXU
    cast = mm_dtype != jnp.dtype(f32)
    sub = 16 if cast else 8                  # bf16 packs 16 rows per sublane pair

    Bp = _round_up(B, sub)
    Hp = _round_up(H, sub)
    Tp = _round_up(T, 128)
    need_tmask = Tp != T
    inv_count = 1.0 / float(H * T)

    def pad2(a, r, c):
        a = jnp.asarray(a, f32)
        return jnp.pad(a, ((0, r - a.shape[0]), (0, c - a.shape[1])))

    # PReLU slope: shared scalar (PyTorch default) or per-channel.
    a1v = jnp.asarray(a1, f32).reshape(-1)
    if a1v.shape[0] == 1:
        alpha = jnp.full((H, 1), a1v[0], dtype=f32)
    elif a1v.shape[0] == H:
        alpha = a1v.reshape(H, 1)
    else:
        raise ValueError("PReLU slope must be scalar or per-hidden-channel")

    # Consolidated per-hidden-channel stream:
    # [b1, alpha, gamma1, beta1, b2, w2[:,0], ..., w2[:,P-1]]  -> (5+P, Hp, 1)
    cvec = jnp.stack(
        [pad2(b1, Hp, 1), pad2(alpha, Hp, 1), pad2(g1, Hp, 1),
         pad2(be1, Hp, 1), pad2(b2, Hp, 1)]
        + [pad2(w2[:, k:k + 1], Hp, 1) for k in range(P)], axis=0)

    w1p = pad2(w1, Hp, Bp)                                             # (Hp, Bp)
    # Fold conv1d_3 into res_out / skip_out: one stacked output matmul.
    wout = jnp.concatenate([pad2(wres @ w3, Bp, Hp),
                            pad2(wskip @ w3, Bp, Hp)], axis=0)         # (2Bp, Hp)
    bout = jnp.concatenate([pad2(wres @ b3 + bres, Bp, 1),
                            pad2(wskip @ b3 + bskip, Bp, 1)], axis=0)  # (2Bp, 1)

    xp = x.astype(mm_dtype if cast else f32)     # bf16 HBM stream when cast
    if (Bp, Tp) != (B, T):
        xp = jnp.pad(xp, ((0, 0), (0, Bp - B), (0, Tp - T)))
    if cast:
        w1p = w1p.astype(mm_dtype)
        wout = wout.astype(mm_dtype)

    def kernel(x_ref, w1_ref, cvec_ref, wout_ref, bout_ref, res_ref, skip_ref):
        xs = x_ref[0]                                        # (Bp, Tp)
        b1_ = cvec_ref[0]
        alpha_ = cvec_ref[1]
        g1_ = cvec_ref[2]
        be1_ = cvec_ref[3]
        b2_ = cvec_ref[4]

        col = lax.broadcasted_iota(jnp.int32, (1, Tp), 1)

        # conv1d_1 (1x1) + PReLU (per-channel slope broadcast).
        c = jnp.dot(w1_ref[...], xs, preferred_element_type=f32) + b1_
        c = jnp.where(c > 0, c, alpha_ * c)

        # norm1: GroupNorm(num_groups=1). Single stats pass over the valid
        # (H, T) region (padded H rows are exactly zero by construction, so
        # only padded time columns need masking), then one fused per-channel
        # scale/shift pass.
        cm = jnp.where(col < T, c, 0.0) if need_tmask else c
        mean = jnp.sum(cm) * inv_count
        var = jnp.sum(cm * cm) * inv_count - mean * mean
        scale = g1_ * lax.rsqrt(var + EPS)                   # (Hp, 1)
        shift = be1_ - mean * scale                          # (Hp, 1)
        c = c * scale + shift

        # conv1d_2: depthwise dilated causal conv (left pad (P-1)*dil, crop)
        # as per-tap lane roll (XLU) + mask (VPU). No (T,T) temporaries.
        acc = cvec_ref[5 + P - 1] * c                        # zero-delay tap
        for k in range(P - 1):
            delay = pad_amt - k * dil                        # > 0
            rolled = pltpu.roll(c, shift=delay, axis=1)
            rolled = jnp.where(col >= delay, rolled, 0.0)
            acc = acc + cvec_ref[5 + k] * rolled
        c = acc + b2_

        # conv1d_3 folded into res_out / skip_out: single stacked matmul,
        # split into two lane-dense (Bp, Tp) stores.
        if cast:
            c = c.astype(mm_dtype)
        y = jnp.dot(wout_ref[...], c, preferred_element_type=f32) + bout_ref[...]
        res_ref[0] = y[:Bp].astype(res_ref.dtype)
        skip_ref[0] = y[Bp:].astype(skip_ref.dtype)

    grid_spec = pltpu.PrefetchScalarGridSpec(
        num_scalar_prefetch=0,
        grid=(N,),                       # one sample per grid step (megacore)
        in_specs=[
            pl.BlockSpec((1, Bp, Tp), lambda n: (n, 0, 0)),
            pl.BlockSpec((Hp, Bp), lambda n: (0, 0)),
            pl.BlockSpec((5 + P, Hp, 1), lambda n: (0, 0, 0)),
            pl.BlockSpec((2 * Bp, Hp), lambda n: (0, 0)),
            pl.BlockSpec((2 * Bp, 1), lambda n: (0, 0)),
        ],
        out_specs=[
            pl.BlockSpec((1, Bp, Tp), lambda n: (n, 0, 0)),
            pl.BlockSpec((1, Bp, Tp), lambda n: (n, 0, 0)),
        ],
    )

    res_p, skip_p = pl.pallas_call(
        kernel,
        out_shape=(jax.ShapeDtypeStruct((N, Bp, Tp), f32),
                   jax.ShapeDtypeStruct((N, Bp, Tp), f32)),
        grid_spec=grid_spec,
        compiler_params=pltpu.CompilerParams(
            dimension_semantics=("parallel",),
            vmem_limit_bytes=_vmem_limit_bytes(),
        ),
    )(xp, w1p, cvec, wout, bout)

    if (Bp, Tp) != (B, T):
        res_p = res_p[:, :B, :T]
        skip_p = skip_p[:, :B, :T]
    return res_p, skip_p


def conv_block_ref(x, params, *, kernel_size, dilation):
    """Pure-JAX reference matching the PyTorch forward."""
    (w1, b1, a1, g1, be1, w2, b2, w3, b3, wres, bres, wskip, bskip) = params
    pad = (kernel_size - 1) * dilation
    N, B, T = x.shape
    c = jnp.einsum('hb,nbt->nht', w1, x) + b1[None]
    c = jnp.where(c > 0, c, a1[0, 0] * c)
    mean = jnp.mean(c, axis=(1, 2), keepdims=True)
    var = jnp.mean((c - mean) ** 2, axis=(1, 2), keepdims=True)
    c = (c - mean) / jnp.sqrt(var + EPS)
    c = c * g1[None] + be1[None]
    cp = jnp.pad(c, ((0, 0), (0, 0), (pad, 0)))          # causal left pad + crop
    acc = jnp.zeros_like(c)
    for k in range(kernel_size):
        acc = acc + w2[None, :, k:k + 1] * cp[:, :, k * dilation:k * dilation + T]
    c = acc + b2[None]
    c = jnp.einsum('oh,nht->not', w3, c) + b3[None]
    res = jnp.einsum('ob,nbt->not', wres, c) + bres[None]
    skip = jnp.einsum('ob,nbt->not', wskip, c) + bskip[None]
    return res, skip


if __name__ == "__main__":
    key = jax.random.PRNGKey(0)
    N, B, H, T = 2, 8, 16, 32          # batch, io_channels, hidden_channels, time
    P, DIL = 3, 2                      # kernel_size, dilation (causal pad = 4)

    keys = jax.random.split(key, 13)

    def nrm(k, shape, scale=0.1):
        return scale * jax.random.normal(k, shape, dtype=jnp.float32)

    x = nrm(keys[0], (N, B, T), 1.0)
    w1 = nrm(keys[1], (H, B));   b1 = nrm(keys[2], (H, 1))
    a1 = jnp.full((1, 1), 0.25, jnp.float32)              # PReLU default slope
    g1 = 1.0 + nrm(keys[3], (H, 1));  be1 = nrm(keys[4], (H, 1))
    w2 = nrm(keys[5], (H, P));   b2 = nrm(keys[6], (H, 1))   # depthwise (H,1,P)->(H,P)
    w3 = nrm(keys[7], (B, H));   b3 = nrm(keys[8], (B, 1))
    wres = nrm(keys[9], (B, B)); bres = nrm(keys[10], (B, 1))
    wskip = nrm(keys[11], (B, B)); bskip = nrm(keys[12], (B, 1))
    params = (w1, b1, a1, g1, be1, w2, b2, w3, b3, wres, bres, wskip, bskip)

    res, skip = conv_block_pallas(x, params, kernel_size=P, dilation=DIL)
    jax.block_until_ready((res, skip))

    res_ref, skip_ref = conv_block_ref(x, params, kernel_size=P, dilation=DIL)
    assert res.shape == res_ref.shape and skip.shape == skip_ref.shape
    assert jnp.allclose(res, res_ref, atol=1e-4, rtol=1e-4), "residual mismatch"
    assert jnp.allclose(skip, skip_ref, atol=1e-4, rtol=1e-4), "skip mismatch"

    print("KERNEL_OK")
</pallas_src>

<mosaic_0001>
module attributes {stable_mosaic.version = 11 : i64} {
  func.func @kernel(%arg0: i32, %arg1: memref<1x8x128xf32, #tpu.memory_space<vmem>>, %arg2: memref<16x8xf32, #tpu.memory_space<vmem>>, %arg3: memref<8x16x1xf32, #tpu.memory_space<vmem>>, %arg4: memref<16x16xf32, #tpu.memory_space<vmem>>, %arg5: memref<16x1xf32, #tpu.memory_space<vmem>>, %arg6: memref<1x8x128xf32, #tpu.memory_space<vmem>>, %arg7: memref<1x8x128xf32, #tpu.memory_space<vmem>>) attributes {dimension_semantics = [#tpu.dimension_semantics<parallel>], iteration_bounds = array<i64: 2>, scalar_prefetch = 0 : i64, scratch_operands = 0 : i64, tpu.core_type = #tpu.core_type<tc>, window_params = [{transform_indices = @transform_0, window_bounds = array<i64: 1, 8, 128>}, {pipeline_mode = #tpu.pipeline_mode<synchronous>, transform_indices = @transform_1, window_bounds = array<i64: 16, 8>}, {pipeline_mode = #tpu.pipeline_mode<synchronous>, transform_indices = @transform_2, window_bounds = array<i64: 8, 16, 1>}, {pipeline_mode = #tpu.pipeline_mode<synchronous>, transform_indices = @transform_3, window_bounds = array<i64: 16, 16>}, {pipeline_mode = #tpu.pipeline_mode<synchronous>, transform_indices = @transform_4, window_bounds = array<i64: 16, 1>}, {transform_indices = @transform_5, window_bounds = array<i64: 1, 8, 128>}, {transform_indices = @transform_6, window_bounds = array<i64: 1, 8, 128>}]} {
    %c0 = arith.constant 0 : index
    %c0_0 = arith.constant 0 : index
    %c0_1 = arith.constant 0 : index
    %0 = vector.load %arg1[%c0, %c0_0, %c0_1] : memref<1x8x128xf32, #tpu.memory_space<vmem>>, vector<1x8x128xf32>
    %1 = vector.shape_cast %0 : vector<1x8x128xf32> to vector<8x128xf32>
    %c0_2 = arith.constant 0 : index
    %c0_3 = arith.constant 0 : index
    %c0_4 = arith.constant 0 : index
    %2 = vector.load %arg3[%c0_2, %c0_3, %c0_4] : memref<8x16x1xf32, #tpu.memory_space<vmem>>, vector<1x16x1xf32>
    %3 = vector.shape_cast %2 : vector<1x16x1xf32> to vector<16x1xf32>
    %c1 = arith.constant 1 : index
    %c0_5 = arith.constant 0 : index
    %c0_6 = arith.constant 0 : index
    %4 = vector.load %arg3[%c1, %c0_5, %c0_6] : memref<8x16x1xf32, #tpu.memory_space<vmem>>, vector<1x16x1xf32>
    %5 = vector.shape_cast %4 : vector<1x16x1xf32> to vector<16x1xf32>
    %c2 = arith.constant 2 : index
    %c0_7 = arith.constant 0 : index
    %c0_8 = arith.constant 0 : index
    %6 = vector.load %arg3[%c2, %c0_7, %c0_8] : memref<8x16x1xf32, #tpu.memory_space<vmem>>, vector<1x16x1xf32>
    %7 = vector.shape_cast %6 : vector<1x16x1xf32> to vector<16x1xf32>
    %c3 = arith.constant 3 : index
    %c0_9 = arith.constant 0 : index
    %c0_10 = arith.constant 0 : index
    %8 = vector.load %arg3[%c3, %c0_9, %c0_10] : memref<8x16x1xf32, #tpu.memory_space<vmem>>, vector<1x16x1xf32>
    %9 = vector.shape_cast %8 : vector<1x16x1xf32> to vector<16x1xf32>
    %c4 = arith.constant 4 : index
    %c0_11 = arith.constant 0 : index
    %c0_12 = arith.constant 0 : index
    %10 = vector.load %arg3[%c4, %c0_11, %c0_12] : memref<8x16x1xf32, #tpu.memory_space<vmem>>, vector<1x16x1xf32>
    %11 = vector.shape_cast %10 : vector<1x16x1xf32> to vector<16x1xf32>
    %12 = tpu.iota {dimensions = array<i32: 1>} : vector<1x128xi32>
    %c0_13 = arith.constant 0 : index
    %c0_14 = arith.constant 0 : index
    %13 = vector.load %arg2[%c0_13, %c0_14] : memref<16x8xf32, #tpu.memory_space<vmem>>, vector<16x8xf32>
    %cst = arith.constant dense<0.000000e+00> : vector<16x128xf32>
    %14 = tpu.matmul %13, %1, %cst {dimension_numbers = #tpu.dot_dimension_numbers<[1], [0], [0], [1], [0, 0, 1, 1], [], []>} : vector<16x8xf32>, vector<8x128xf32>, vector<16x128xf32> -> vector<16x128xf32>
    %15 = vector.broadcast %3 : vector<16x1xf32> to vector<16x128xf32>
    %16 = arith.addf %14, %15 : vector<16x128xf32>
    %cst_15 = arith.constant 0.000000e+00 : f32
    %17 = vector.broadcast %cst_15 : f32 to vector<16x128xf32>
    %18 = arith.cmpf ogt, %16, %17 : vector<16x128xf32>
    %19 = vector.broadcast %5 : vector<16x1xf32> to vector<16x128xf32>
    %20 = arith.mulf %19, %16 : vector<16x128xf32>
    %21 = arith.select %18, %16, %20 : vector<16x128xi1>, vector<16x128xf32>
    %c32_i32 = arith.constant 32 : i32
    %22 = vector.broadcast %c32_i32 : i32 to vector<1x128xi32>
    %23 = arith.cmpi slt, %12, %22 : vector<1x128xi32>
    %cst_16 = arith.constant 0.000000e+00 : f32
    %24 = vector.shape_cast %23 : vector<1x128xi1> to vector<1x128xi1>
    %25 = vector.broadcast %24 : vector<1x128xi1> to vector<16x128xi1>
    %26 = vector.broadcast %cst_16 : f32 to vector<16x128xf32>
    %27 = arith.select %25, %21, %26 : vector<16x128xi1>, vector<16x128xf32>
    %28 = vector.shape_cast %27 : vector<16x128xf32> to vector<1x16x128xf32>
    %cst_17 = arith.constant dense<0.000000e+00> : vector<1xf32>
    %29 = vector.multi_reduction <add>, %28, %cst_17 [1, 2] : vector<1x16x128xf32> to vector<1xf32>
    %30 = vector.shape_cast %29 : vector<1xf32> to vector<1x1x1xf32>
    %31 = vector.extract %30[0, 0, 0] : f32 from vector<1x1x1xf32>
    %cst_18 = arith.constant 0.001953125 : f32
    %32 = arith.mulf %31, %cst_18 : f32
    %33 = arith.mulf %27, %27 : vector<16x128xf32>
    %34 = vector.shape_cast %33 : vector<16x128xf32> to vector<1x16x128xf32>
    %cst_19 = arith.constant dense<0.000000e+00> : vector<1xf32>
    %35 = vector.multi_reduction <add>, %34, %cst_19 [1, 2] : vector<1x16x128xf32> to vector<1xf32>
    %36 = vector.shape_cast %35 : vector<1xf32> to vector<1x1x1xf32>
    %37 = vector.extract %36[0, 0, 0] : f32 from vector<1x1x1xf32>
    %cst_20 = arith.constant 0.001953125 : f32
    %38 = arith.mulf %37, %cst_20 : f32
    %39 = arith.mulf %32, %32 : f32
    %40 = arith.subf %38, %39 : f32
    %cst_21 = arith.constant 9.99999993E-9 : f32
    %41 = arith.addf %40, %cst_21 : f32
    %42 = math.rsqrt %41 : f32
    %43 = vector.broadcast %42 : f32 to vector<16x1xf32>
    %44 = arith.mulf %7, %43 : vector<16x1xf32>
    %45 = vector.broadcast %32 : f32 to vector<16x1xf32>
    %46 = arith.mulf %45, %44 : vector<16x1xf32>
    %47 = arith.subf %9, %46 : vector<16x1xf32>
    %48 = vector.broadcast %44 : vector<16x1xf32> to vector<16x128xf32>
    %49 = arith.mulf %21, %48 : vector<16x128xf32>
    %50 = vector.broadcast %47 : vector<16x1xf32> to vector<16x128xf32>
    %51 = arith.addf %49, %50 : vector<16x128xf32>
    %c7 = arith.constant 7 : index
    %c0_22 = arith.constant 0 : index
    %c0_23 = arith.constant 0 : index
    %52 = vector.load %arg3[%c7, %c0_22, %c0_23] : memref<8x16x1xf32, #tpu.memory_space<vmem>>, vector<1x16x1xf32>
    %53 = vector.shape_cast %52 : vector<1x16x1xf32> to vector<16x1xf32>
    %54 = vector.broadcast %53 : vector<16x1xf32> to vector<16x128xf32>
    %55 = arith.mulf %54, %51 : vector<16x128xf32>
    %c4_i32 = arith.constant 4 : i32
    %56 = tpu.dynamic_rotate %51 by %c4_i32 dim 1 : vector<16x128xf32>, i32 -> vector<16x128xf32>
    %c4_i32_24 = arith.constant 4 : i32
    %57 = vector.broadcast %c4_i32_24 : i32 to vector<1x128xi32>
    %58 = arith.cmpi sge, %12, %57 : vector<1x128xi32>
    %cst_25 = arith.constant 0.000000e+00 : f32
    %59 = vector.shape_cast %58 : vector<1x128xi1> to vector<1x128xi1>
    %60 = vector.broadcast %59 : vector<1x128xi1> to vector<16x128xi1>
    %61 = vector.broadcast %cst_25 : f32 to vector<16x128xf32>
    %62 = arith.select %60, %56, %61 : vector<16x128xi1>, vector<16x128xf32>
    %c5 = arith.constant 5 : index
    %c0_26 = arith.constant 0 : index
    %c0_27 = arith.constant 0 : index
    %63 = vector.load %arg3[%c5, %c0_26, %c0_27] : memref<8x16x1xf32, #tpu.memory_space<vmem>>, vector<1x16x1xf32>
    %64 = vector.shape_cast %63 : vector<1x16x1xf32> to vector<16x1xf32>
    %65 = vector.broadcast %64 : vector<16x1xf32> to vector<16x128xf32>
    %66 = arith.mulf %65, %62 : vector<16x128xf32>
    %67 = arith.addf %55, %66 : vector<16x128xf32>
    %c2_i32 = arith.constant 2 : i32
    %68 = tpu.dynamic_rotate %51 by %c2_i32 dim 1 : vector<16x128xf32>, i32 -> vector<16x128xf32>
    %c2_i32_28 = arith.constant 2 : i32
    %69 = vector.broadcast %c2_i32_28 : i32 to vector<1x128xi32>
    %70 = arith.cmpi sge, %12, %69 : vector<1x128xi32>
    %cst_29 = arith.constant 0.000000e+00 : f32
    %71 = vector.shape_cast %70 : vector<1x128xi1> to vector<1x128xi1>
    %72 = vector.broadcast %71 : vector<1x128xi1> to vector<16x128xi1>
    %73 = vector.broadcast %cst_29 : f32 to vector<16x128xf32>
    %74 = arith.select %72, %68, %73 : vector<16x128xi1>, vector<16x128xf32>
    %c6 = arith.constant 6 : index
    %c0_30 = arith.constant 0 : index
    %c0_31 = arith.constant 0 : index
    %75 = vector.load %arg3[%c6, %c0_30, %c0_31] : memref<8x16x1xf32, #tpu.memory_space<vmem>>, vector<1x16x1xf32>
    %76 = vector.shape_cast %75 : vector<1x16x1xf32> to vector<16x1xf32>
    %77 = vector.broadcast %76 : vector<16x1xf32> to vector<16x128xf32>
    %78 = arith.mulf %77, %74 : vector<16x128xf32>
    %79 = arith.addf %67, %78 : vector<16x128xf32>
    %80 = vector.broadcast %11 : vector<16x1xf32> to vector<16x128xf32>
    %81 = arith.addf %79, %80 : vector<16x128xf32>
    %c0_32 = arith.constant 0 : index
    %c0_33 = arith.constant 0 : index
    %82 = vector.load %arg4[%c0_32, %c0_33] : memref<16x16xf32, #tpu.memory_space<vmem>>, vector<16x16xf32>
    %cst_34 = arith.constant dense<0.000000e+00> : vector<16x128xf32>
    %83 = tpu.matmul %82, %81, %cst_34 {dimension_numbers = #tpu.dot_dimension_numbers<[1], [0], [0], [1], [0, 0, 1, 1], [], []>} : vector<16x16xf32>, vector<16x128xf32>, vector<16x128xf32> -> vector<16x128xf32>
    %c0_35 = arith.constant 0 : index
    %c0_36 = arith.constant 0 : index
    %84 = vector.load %arg5[%c0_35, %c0_36] : memref<16x1xf32, #tpu.memory_space<vmem>>, vector<16x1xf32>
    %85 = vector.broadcast %84 : vector<16x1xf32> to vector<16x128xf32>
    %86 = arith.addf %83, %85 : vector<16x128xf32>
    %87 = vector.extract_strided_slice %86 {offsets = [0, 0], sizes = [8, 128], strides = [1, 1]} : vector<16x128xf32> to vector<8x128xf32>
    %c0_37 = arith.constant 0 : index
    %c0_38 = arith.constant 0 : index
    %c0_39 = arith.constant 0 : index
    %88 = vector.load %arg6[%c0_37, %c0_38, %c0_39] : memref<1x8x128xf32, #tpu.memory_space<vmem>>, vector<1x8x128xf32>
    %89 = vector.shape_cast %88 : vector<1x8x128xf32> to vector<8x128xf32>
    %90 = vector.shape_cast %87 : vector<8x128xf32> to vector<1x8x128xf32>
    tpu.vector_store %arg6[%c0_37, %c0_38, %c0_39], %90 {strides = array<i32>} : memref<1x8x128xf32, #tpu.memory_space<vmem>>, vector<1x8x128xf32>,
    %91 = vector.extract_strided_slice %86 {offsets = [8, 0], sizes = [8, 128], strides = [1, 1]} : vector<16x128xf32> to vector<8x128xf32>
    %c0_40 = arith.constant 0 : index
    %c0_41 = arith.constant 0 : index
    %c0_42 = arith.constant 0 : index
    %92 = vector.load %arg7[%c0_40, %c0_41, %c0_42] : memref<1x8x128xf32, #tpu.memory_space<vmem>>, vector<1x8x128xf32>
    %93 = vector.shape_cast %92 : vector<1x8x128xf32> to vector<8x128xf32>
    %94 = vector.shape_cast %91 : vector<8x128xf32> to vector<1x8x128xf32>
    tpu.vector_store %arg7[%c0_40, %c0_41, %c0_42], %94 {strides = array<i32>} : memref<1x8x128xf32, #tpu.memory_space<vmem>>, vector<1x8x128xf32>,
    return
  }
  func.func @transform_0(%arg0: i32) -> (i32, i32, i32) {
    %c0_i32 = arith.constant 0 : i32
    %c0_i32_0 = arith.constant 0 : i32
    %c0_i32_1 = arith.constant 0 : i32
    return %arg0, %c0_i32, %c0_i32_0 : i32, i32, i32
  }
  func.func @transform_1(%arg0: i32) -> (i32, i32) {
    %c0_i32 = arith.constant 0 : i32
    %c0_i32_0 = arith.constant 0 : i32
    %c0_i32_1 = arith.constant 0 : i32
    return %c0_i32, %c0_i32_0 : i32, i32
  }
  func.func @transform_2(%arg0: i32) -> (i32, i32, i32) {
    %c0_i32 = arith.constant 0 : i32
    %c0_i32_0 = arith.constant 0 : i32
    %c0_i32_1 = arith.constant 0 : i32
    %c0_i32_2 = arith.constant 0 : i32
    return %c0_i32, %c0_i32_0, %c0_i32_1 : i32, i32, i32
  }
  func.func @transform_3(%arg0: i32) -> (i32, i32) {
    %c0_i32 = arith.constant 0 : i32
    %c0_i32_0 = arith.constant 0 : i32
    %c0_i32_1 = arith.constant 0 : i32
    return %c0_i32, %c0_i32_0 : i32, i32
  }
  func.func @transform_4(%arg0: i32) -> (i32, i32) {
    %c0_i32 = arith.constant 0 : i32
    %c0_i32_0 = arith.constant 0 : i32
    %c0_i32_1 = arith.constant 0 : i32
    return %c0_i32, %c0_i32_0 : i32, i32
  }
  func.func @transform_5(%arg0: i32) -> (i32, i32, i32) {
    %c0_i32 = arith.constant 0 : i32
    %c0_i32_0 = arith.constant 0 : i32
    %c0_i32_1 = arith.constant 0 : i32
    return %arg0, %c0_i32, %c0_i32_0 : i32, i32, i32
  }
  func.func @transform_6(%arg0: i32) -> (i32, i32, i32) {
    %c0_i32 = arith.constant 0 : i32
    %c0_i32_0 = arith.constant 0 : i32
    %c0_i32_1 = arith.constant 0 : i32
    return %arg0, %c0_i32, %c0_i32_0 : i32, i32, i32
  }
}

</mosaic_0001>

<bundles_post_ra>
// kernel: tpu_custom_call.1
= control target key start
LH: loop header
LB: loop body
LE: loop exit
PB: predicated region body
PF: predicated region fallthrough
CT: control target
= control target key end

     0   :  { %s1069_s0 = inlined_call_operand.vmem [shape: f32[2,8,128], index: 0, kind: input, shape index: {}]   ;;  %s1070_s1 = inlined_call_operand.vmem [shape: f32[16,8], index: 1, kind: input, shape index: {}]   ;;  %s1071_s2 = inlined_call_operand.vmem [shape: f32[8,16,1], index: 2, kind: input, shape index: {}]   ;;  %s1072_s3 = inlined_call_operand.vmem [shape: f32[16,16], index: 3, kind: input, shape index: {}]   ;;  %s1073_s4 = inlined_call_operand.vmem [shape: f32[16,1], index: 4, kind: input, shape index: {}]   ;;  %s1074_s5 = inlined_call_operand.hbm [shape: f32[2,8,128], index: 5, kind: output, shape index: {0}]   ;;  %s1075_s6 = inlined_call_operand.hbm [shape: f32[2,8,128], index: 6, kind: output, shape index: {1}]  }
   0x1   :  { %1076 = sst [smem:[#allocation8_spill]] %s1069_s0 }
   0x2   :  { %12 = vsyncpa [#allocation3], 0 }
   0x3   :  { %14 = vsyncpa [#allocation3 + $0x1], 0 }
   0x4   :  { %15 = vsyncpa [#allocation5], 0 }
   0x5   :  { %17 = vsyncpa [#allocation5 + $0x1], 0  ;;  %s887_s21 = smov 0   ;;  %s889_s22 = smov 0  }
   0x6   :  { %s891_s23 = smov 0   ;;  %s893_s24 = smov 0  }
   0x7 LB: > { %s908_s25 = sadd.s32 4294967295, %s847_s24   ;;  %s661_s26 = sadd.s32 4294967294, %s847_s24   ;;  %s847_s24 = sphi %s893_s24, %s1083_s24   ;;  %s843_s23 = sphi %s891_s23, %s1082_s23   ;;  %s839_s22 = sphi %s889_s22, %s1081_s22   ;;  %s835_s21 = sphi %s887_s21, %s1080_s21  }
   0x8   : > { %s912_s27 = sadd.s32 1, %s847_s24   ;;  %s140_s28 = sadd.s32 1, %s843_s23 }
   0x9   : > { %s137_s29 = ssub.s32 %s847_s24, %s912_s27  ;;  %p150_p0 = scmp.ne.s32.totalorder %s843_s23, %s839_s22 }
   0xa   : > { %p138_p1 = scmp.eq.s32.totalorder %s137_s29, 0  ;;  %p151_p2 = scmp.eq.s32.totalorder %s908_s25, 1 }
   0xb   : > { %p156_p3 = scmp.ne.s32.totalorder %s839_s22, %s835_s21  ;;  %p157_p4 = scmp.eq.s32.totalorder %s661_s26, 1 }
   0xc   : > { %s923_s30 = scalar_select %p138_p1, %s843_s23, %s140_s28  }
   0xd   : > { %p925_p5 = por %p151_p2, %p150_p0  ;;  %p929_p6 = por %p157_p4, %p156_p3 }
   0xe   : > { %p664_p7 = scmp.ge.s32.totalorder %s847_s24, 1  ;;  %p220_p8 = scmp.lt.s32.totalorder %s847_s24, 3 }
  0x10   : > { %p221_p9 = pnand %p664_p7, %p220_p8 }
  0x11   : > { %p254_p10 = scmp.lt.s32.totalorder (!%p221_p9), %s908_s25, 1  ;;  %s1079_s0 = sld [smem:[#allocation8_spill]] (!%p221_p9) }
  0x12   : > { %224 = sbr.rel (%p221_p9) target bundleno = 831 (0x33f), region = 40  ;;  %s851_s29 = smov (!%p221_p9), 2  }
  0x13   : > { %s688_s9 = sshll.u32 (!%p221_p9), %s908_s25, 3 }
  0x14   : > { %s564_s19 = scalar_lea.hbm (!%p221_p9), %s1075_s6, %s688_s9 }
  0x15   : > { %s568_s26 = sshll.u32 (!%p221_p9), %s564_s19, 4  ;;  %s569_s26 = int_to_ptr.hbm [resolvable:$true] %s568_s26 }
  0x17   : > { %v259_v0 = vld [vmem:[%s1071_s2] sm:$0xff]  ;;  %v849_v1 = vmov 0   ;;  %v668_v2 = vld [vmem:[%s1071_s2 + $0x10] sm:$0xff]  ;;  %s255_s13 = scalar_select %p254_p10, %s908_s25, 1  ;;  %vm287_vm0 = vcmask 64512   ;;  %v276_v4 = vld [vmem:[%s1070_s1 + $0x8] sm:$0xff]  ;;  %v273_v12 = vlaneseq }
  0x18   : > { %748 = vset.pattern.permute.xlu0 %v849_v1  ;;  %749 = vset.pattern.permute.xlu1 %v849_v1  ;;  %v275_v3 = vld [vmem:[%s1070_s1] sm:$0xff]  ;;  %v260_v6 = vld [vmem:[%s1071_s2 + $0x8] sm:$0xff]  ;;  %v669_v7 = vld [vmem:[%s1071_s2 + $0x18] sm:$0xff]  ;;  %vm502_vm9 = vcmask 130048  }
  0x19   : > { %279 = vperm.xlu0 %748, %v259_v0   ;;  %321 = vperm.xlu1 %749, %v668_v2   ;;  %s667_s14 = sshll.u32 %s255_s13, 3  ;;  %v958_v14 = vand.u32 127, %v273_v12  ;;  %v670_v50 = vld [vmem:[%s1071_s2 + $0x20] sm:$0xff]  ;;  %v671_v51 = vld [vmem:[%s1071_s2 + $0x28] sm:$0xff]  ;;  %v673_v56 = vld [vmem:[%s1071_s2 + $0x38] sm:$0xff] }
  0x1a   : > { %750 = vset.pattern.permute.xlu2 %v849_v1  ;;  %s257_s17 = scalar_lea.vmem %s1079_s0, %s667_s14  ;;  %v672_v60 = vld [vmem:[%s1071_s2 + $0x30] sm:$0xff]  ;;  %v681_v61 = vld [vmem:[%s1071_s2 + $0x58] sm:$0xff]  ;;  %v683_v0 = vld [vmem:[%s1071_s2 + $0x68] sm:$0xff] }
  0x1b   : > { %v258_v5 = vld [vmem:[%s257_s17] sm:$0xff]  ;;  %vm333_vm3 = vcmp.lt.s32.totalorder %v958_v14, 32  ;;  %v678_v63 = vld [vmem:[%s1071_s2 + $0x70] sm:$0xff]  ;;  %v679_v1 = vld [vmem:[%s1071_s2 + $0x78] sm:$0xff]  ;;  %vm428_vm7 = vcmp.ge.s32.totalorder %v958_v14, 4  ;;  %vm454_vm8 = vcmp.ge.s32.totalorder %v958_v14, 2 }
  0x1c   : > { %309 = vmatpush.msra.mxu0 %v258_v5  ;;  %692 = vmatpush.msra.mxu3 %v258_v5  ;;  %v680_v2 = vld [vmem:[%s1071_s2 + $0x50] sm:$0xff]  ;;  %v682_v12 = vld [vmem:[%s1071_s2 + $0x60] sm:$0xff] }
  0x1d   : > { %676 = vmatmul.msk.f32.vlgmr.msra.gmra.mxu0 %vm287_vm0, %v275_v3  ;;  %677 = vmatmul.msk.f32.vlgmr.msra.gmra.mxu3 %vm287_vm0, %v276_v4 }
  0x21   : > { %284 = vperm.xlu0 %748, %v260_v6   ;;  %326 = vperm.xlu1 %749, %v669_v7  }
  0x8b   : > { %v280_v8 = vpop.permute.xlu0 %279  ;;  %v322_v9 = vpop.permute.xlu1 %321 }
  0x93   : > { %v285_v15 = vpop.permute.xlu0 %284  ;;  %v327_v18 = vpop.permute.xlu1 %326 }
  0x9a   : > { %v311_v10 = vpop.f32.mrf.mxu0 }
  0x9b   : > { %v312_v11 = vadd.f32 %v311_v10, %v280_v8 }
  0x9d   : > { %v329_v13 = vmul.f32 %v322_v9, %v312_v11  ;;  %vm317_vm1 = vcmp.gt.f32.partialorder %v312_v11, 0.0 }
  0x9f   : > { %v960_v20 = vsel %vm317_vm1, %v312_v11, %v329_v13  ;;  %v674_v11 = vld [vmem:[%s1071_s2 + $0x40] sm:$0xff]  ;;  %v675_v13 = vld [vmem:[%s1071_s2 + $0x48] sm:$0xff] }
  0xa0   : > { %v314_v16 = vpop.f32.mrf.mxu3  ;;  %v336_v22 = vsel %vm333_vm3, %v960_v20, 0.0 }
  0xa1   : > { %v315_v17 = vadd.f32 %v314_v16, %v285_v15  ;;  %v349_v26 = vmul.f32 %v336_v22, %v336_v22  ;;  %v490_v15 = vld [vmem:[%s1073_s4] sm:$0xff]  ;;  %v491_v16 = vld [vmem:[%s1073_s4 + $0x8] sm:$0xff] }
  0xa3   : > { %v330_v19 = vmul.f32 %v327_v18, %v315_v17  ;;  %vm318_vm2 = vcmp.gt.f32.partialorder %v315_v17, 0.0 }
  0xa5   : > { %v963_v21 = vsel %vm318_vm2, %v315_v17, %v330_v19 }
  0xa6   : > { %v337_v23 = vsel %vm333_vm3, %v963_v21, 0.0 }
  0xa7   : > { %v338_v24 = vadd.f32 %v337_v23, %v336_v22  ;;  %v350_v25 = vmul.f32 %v337_v23, %v337_v23 }
  0xa9   : > { %339 = vadd.xlane.f32.xlu2 %v338_v24  ;;  %v351_v27 = vadd.f32 %v350_v25, %v349_v26 }
  0xb1   : > { %352 = vadd.xlane.f32.xlu2 %v351_v27 }
 0x11c   : > { %v340_v28 = vpop.xlane.xlu2 %339 }
 0x11d   : > { %v341_v29 = vrot.slane %v340_v28, 4 }
 0x11f   : > { %v342_v30 = vadd.f32 %v341_v29, %v340_v28 }
 0x121   : > { %v343_v31 = vrot.slane %v342_v30, 2 }
 0x123   : > { %v344_v32 = vadd.f32 %v343_v31, %v342_v30 }
 0x124   : > { %v353_v33 = vpop.xlane.xlu2 %352 }
 0x125   : > { %v354_v34 = vrot.slane %v353_v33, 4  ;;  %v345_v35 = vrot.slane %v344_v32, 1 }
 0x127   : > { %v355_v36 = vadd.f32 %v354_v34, %v353_v33  ;;  %v346_v37 = vadd.f32 %v345_v35, %v344_v32 }
 0x129   : > { %v356_v38 = vrot.slane %v355_v36, 2  ;;  %695 = vpush %v346_v37 }
 0x12b   : > { %v357_v39 = vadd.f32 %v356_v38, %v355_v36 }
 0x12d   : > { %v358_v40 = vrot.slane %v357_v39, 1 }
 0x12f   : > { %v359_v41 = vadd.f32 %v358_v40, %v357_v39 }
 0x131   : > { %697 = vpush %v359_v41 }
 0x15a   : > { %s696_s11 = spop %695 }
 0x15b   : > { %s348_s12 = smul.f32 0.001953125, %s696_s11 }
 0x15d   : > { %s362_s13 = smul.f32 %s348_s12, %s348_s12  ;;  %v380_v55 = vstv %s348_s12 }
 0x162   : > { %s698_s14 = spop %697 }
 0x163   : > { %s361_s15 = smul.f32 0.001953125, %s698_s14  ;;  %s550_s14 = scalar_lea.hbm %s1074_s5, %s688_s9 }
 0x165   : > { %s363_s16 = ssub.f32 %s361_s15, %s362_s13 }
 0x167   : > { %s364_s17 = sadd.f32 1e-08, %s363_s16  ;;  %s554_s16 = sshll.u32 %s550_s14, 4  ;;  %s555_s16 = int_to_ptr.hbm [resolvable:$true] %s554_s16 }
 0x168   : > { %s767_s11 = sshra.s32 %s555_s16, 4  ;;  %s768_s11 = int_to_ptr.hbm [resolvable:$true] %s767_s11 }
 0x169   : > { %v365_v42 = vstv %s364_s17  ;;  %s769_s13 = scalar_lea.hbm %s768_s11, 8  ;;  %s773_s17 = scalar_lea.hbm %s1074_s5, 16 }
 0x16a   : > { %751 = vrsqrt.f32 %v365_v42  ;;  %vm372_vm5 = vweird.f32 %v365_v42  ;;  %p770_p11 = scmp.ne.s32.totalorder %s768_s11, %s769_s13  ;;  %p774_p0 = scmp.lt.s32.totalorder %s768_s11, %s1074_s5 }
 0x16b   : > { %p775_p1 = scmp.lt.s32.totalorder %s773_s17, %s769_s13 }
 0x16c   : > { %p771_p12 = pnand %p770_p11, %p925_p5 }
 0x16d   : > { %p776_p2 = por %p775_p1, %p774_p0 }
 0x16e   : > { %p772_p13 = pneg %p771_p12 }
 0x170   : > { %v752_v43 = vpop.eup %751  ;;  %p777_p3 = pnand %p776_p2, %p772_p13 }
 0x171   : > { %v367_v44 = vmul.f32 %v752_v43, %v365_v42  ;;  %vm373_vm4 = vweird.f32 %v752_v43 }
 0x172   : > { %vm374_vm6 = vmor %vm372_vm5, %vm373_vm4 }
 0x173   : > { %v368_v45 = vmul.f32 %v752_v43, %v367_v44  ;;  %v488_v44 = vld [vmem:[%s1072_s3] sm:$0xff] }
 0x175   : > { %v369_v46 = vmul.f32 0.5, %v368_v45  ;;  %v489_v45 = vld [vmem:[%s1072_s3 + $0x8] sm:$0xff] }
 0x177   : > { %v370_v47 = vsub.f32 1.5, %v369_v46 }
 0x179   : > { %v371_v48 = vmul.f32 %v752_v43, %v370_v47 }
 0x17b   : > { %v375_v49 = vsel %vm374_vm6, %v752_v43, %v371_v48 }
 0x17c   : > { %699 = vpush %v375_v49 }
 0x1ad   : > { %s700_s28 = spop %699 }
 0x1ae   : > { %v377_v52 = vstv %s700_s28  ;;  %s850_s28 = smov 4  }
 0x1af   : > { %v378_v53 = vmul.f32 %v670_v50, %v377_v52  ;;  %v379_v54 = vmul.f32 %v671_v51, %v377_v52 }
 0x1b1   : > { %v382_v57 = vmul.f32 %v380_v55, %v379_v54  ;;  %392 = vperm.xlu0 %748, %v379_v54   ;;  %387 = vperm.xlu1 %749, %v378_v53   ;;  %v381_v58 = vmul.f32 %v380_v55, %v378_v53 }
 0x1b3   : > { %v384_v59 = vsub.f32 %v673_v56, %v382_v57  ;;  %v383_v62 = vsub.f32 %v672_v60, %v381_v58 }
 0x1b5   : > { %404 = vperm.xlu2 %750, %v384_v59  }
 0x1b9   : > { %443 = vperm.xlu1 %749, %v681_v61   ;;  %399 = vperm.xlu0 %748, %v383_v62  }
 0x1bd   : > { %414 = vperm.xlu2 %750, %v678_v63  }
 0x1c1   : > { %469 = vperm.xlu1 %749, %v683_v0   ;;  %419 = vperm.xlu0 %748, %v679_v1  }
 0x1c9   : > { %438 = vperm.xlu0 %748, %v680_v2  }
 0x20f   : > { %v405_v5 = vpop.permute.xlu2 %404 }
 0x223   : > { %v393_v3 = vpop.permute.xlu0 %392  ;;  %v388_v7 = vpop.permute.xlu1 %387 }
 0x224   : > { %v396_v4 = vmul.f32 %v393_v3, %v963_v21  ;;  %v395_v8 = vmul.f32 %v388_v7, %v960_v20  ;;  %v415_v21 = vpop.permute.xlu2 %414 }
 0x226   : > { %v408_v6 = vadd.f32 %v405_v5, %v396_v4 }
 0x228   : > { %426 = vrot.lane.b32.xlu1 %v408_v6, %s850_s28 }
 0x22b   : > { %v400_v9 = vpop.permute.xlu0 %399  ;;  %v444_v17 = vpop.permute.xlu1 %443 }
 0x22c   : > { %v407_v10 = vadd.f32 %v400_v9, %v395_v8 }
 0x22e   : > { %450 = vrot.lane.b32.xlu2 %v407_v10, %s851_s29  ;;  %424 = vrot.lane.b32.xlu0 %v407_v10, %s850_s28  ;;  %v422_v33 = vmul.f32 %v415_v21, %v407_v10 }
 0x230   : > { %452 = vrot.lane.b32.xlu1 %v408_v6, %s851_s29  ;;  %s1020_s29 = sand.u32 1, %s839_s22  }
 0x231   : > { %s665_s10 = sshll.u32 %s1020_s29, 3  ;;  %s535_s28 = scalar_lea.sflag [#allocation3], %s1020_s29 }
 0x232   : > { %s246_s12 = scalar_lea.vmem [#allocation2], %s665_s10  ;;  %s253_s25 = scalar_lea.vmem [#allocation4], %s665_s10 }
 0x233   : > { %v420_v18 = vpop.permute.xlu0 %419  ;;  %v470_v19 = vpop.permute.xlu1 %469  ;;  %s552_s15 = sshll.u32 %s246_s12, 4  ;;  %s566_s20 = sshll.u32 %s253_s25, 4  ;;  %s553_s15 = int_to_ptr.vmem [resolvable:$true] %s552_s15  ;;  %s567_s20 = int_to_ptr.vmem [resolvable:$true] %s566_s20 }
 0x234   : > { %v423_v30 = vmul.f32 %v420_v18, %v408_v6 }
 0x236   : > { %478 = vperm.xlu2 %750, %v674_v11   ;;  %464 = vperm.xlu0 %748, %v682_v12  }
 0x238   : > { %483 = vperm.xlu1 %749, %v675_v13  }
 0x23b   : > { %v439_v20 = vpop.permute.xlu0 %438 }
 0x23e   : > { %494 = vperm.xlu0 %748, %v490_v15  }
 0x240   : > { %499 = vperm.xlu1 %749, %v491_v16  }
 0x288   : > { %v451_v25 = vpop.permute.xlu2 %450 }
 0x289   : > { %v457_v35 = vsel %vm454_vm8, %v451_v25, 0.0 }
 0x290   : > { %v479_v42 = vpop.permute.xlu2 %478 }
 0x29a   : > { %v427_v22 = vpop.permute.xlu1 %426 }
 0x29b   : > { %v432_v23 = vsel %vm428_vm7, %v427_v22, 0.0 }
 0x29c   : > { %v447_v28 = vmul.f32 %v444_v17, %v432_v23 }
 0x29e   : > { %v449_v34 = vadd.f32 %v447_v28, %v423_v30 }
 0x2a0   : > { %v425_v24 = vpop.permute.xlu0 %424 }
 0x2a1   : > { %v431_v26 = vsel %vm428_vm7, %v425_v24, 0.0 }
 0x2a2   : > { %v453_v27 = vpop.permute.xlu1 %452  ;;  %v446_v31 = vmul.f32 %v439_v20, %v431_v26 }
 0x2a3   : > { %v458_v29 = vsel %vm454_vm8, %v453_v27, 0.0 }
 0x2a4   : > { %v473_v32 = vmul.f32 %v470_v19, %v458_v29  ;;  %v448_v37 = vadd.f32 %v446_v31, %v422_v33 }
 0x2a6   : > { %v475_v39 = vadd.f32 %v473_v32, %v449_v34 }
 0x2a8   : > { %v465_v36 = vpop.permute.xlu0 %464 }
 0x2a9   : > { %v472_v38 = vmul.f32 %v465_v36, %v457_v35 }
 0x2aa   : > { %v484_v40 = vpop.permute.xlu1 %483 }
 0x2ab   : > { %v474_v41 = vadd.f32 %v472_v38, %v448_v37  ;;  %v487_v14 = vadd.f32 %v484_v40, %v475_v39 }
 0x2ad   : > { %523 = vmatpush.msra.mxu1 %v487_v14  ;;  %693 = vmatpush.msra.mxu2 %v487_v14  ;;  %v486_v43 = vadd.f32 %v479_v42, %v474_v41 }
 0x2af   : > { %524 = vmatpush.msra.mxu1 %v486_v43  ;;  %694 = vmatpush.msra.mxu2 %v486_v43 }
 0x2b0   : > { %684 = vmatmul.msk.f32.vlgmr.msra.gmra.mxu1 %vm502_vm9, %v488_v44  ;;  %685 = vmatmul.msk.f32.vlgmr.msra.gmra.mxu2 %vm502_vm9, %v489_v45  ;;  %v495_v46 = vpop.permute.xlu0 %494 }
 0x32d   : > { %v526_v47 = vpop.f32.mrf.mxu1 }
 0x32e   : > { %v527_v48 = vadd.f32 %v526_v47, %v495_v46 }
 0x330   : > { %532 = vst [vmem:[%s246_s12] sm:$0xff] %v527_v48 }
 0x331   : > { %780 = shalt.err (!%p777_p3)
}
 0x332   : > { %701 = dma.vmem_to_hbm [thread:$0]  (%p925_p5), %s553_s15, 128, %s555_s16, %s535_s28   ;;  %v500_v49 = vpop.permute.xlu1 %499 }
 0x333   : > { %v529_v50 = vpop.f32.mrf.mxu2  ;;  %s540_s0 = scalar_lea.sflag [#allocation5], %s1020_s29  ;;  %s795_s10 = sshra.s32 %s569_s26, 4  ;;  %s796_s10 = int_to_ptr.hbm [resolvable:$true] %s795_s10 }
 0x334   : > { %v530_v51 = vadd.f32 %v529_v50, %v500_v49  ;;  %s797_s12 = scalar_lea.hbm %s796_s10, 8  ;;  %s801_s13 = scalar_lea.hbm %s1075_s6, 16 }
 0x335   : > { %p798_p4 = scmp.ne.s32.totalorder %s796_s10, %s797_s12  ;;  %p802_p9 = scmp.lt.s32.totalorder %s796_s10, %s1075_s6 }
 0x336   : > { %533 = vst [vmem:[%s253_s25] sm:$0xff] %v530_v51  ;;  %p803_p10 = scmp.lt.s32.totalorder %s801_s13, %s797_s12 }
 0x337   : > { %p799_p7 = pnand %p798_p4, %p925_p5 }
 0x338   : > { %p804_p11 = por %p803_p10, %p802_p9 }
 0x339   : > { %p800_p8 = pneg %p799_p7 }
 0x33b   : > { %p805_p12 = pnand %p804_p11, %p800_p8 }
 0x33d   : > { %808 = shalt.err (!%p805_p12)
}
 0x33e   : > { %702 = dma.vmem_to_hbm [thread:$0]  (%p925_p5), %s567_s20, 128, %s569_s26, %s540_s0  }
 0x33f PF: > { %p712_p13 = scmp.ge.s32.totalorder %s847_s24, 2  ;;  %s580_s29 = sand.u32 1, %s835_s21  }
 0x340   : > { %s581_s16 = scalar_lea.sflag [#allocation3], %s580_s29 }
 0x341   : > { %p706_p0 = pnand %p712_p13, %p929_p6 }
 0x343   : > { %p707_p1 = pneg %p706_p0 }
 0x345   : > { %826 = dma.done.wait (%p707_p1), %s581_s16, 128  }
 0x346   : > { %828 = vsyncadd (%p707_p1), %s581_s16, 4294967168  ;;  %s591_s25 = scalar_lea.sflag [#allocation5], %s580_s29 }
 0x347   : > { %830 = dma.done.wait (%p707_p1), %s591_s25, 128  }
 0x348   : > { %832 = vsyncadd (%p707_p1), %s591_s25, 4294967168  ;;  %p20_p5 = scmp.ge.s32.totalorder %s912_s27, 4   ;;  %s1080_s21 = smov %s839_s22 }
 0x349   : > { %s1081_s22 = smov %s843_s23  ;;  %s1082_s23 = smov %s923_s30 }
 0x34a   : > { %s1083_s24 = smov %s912_s27  ;;  %22 = sbr.rel (!%p20_p5) target bundleno = 7 (0x7), region = 99 }
 0x34f   :  { %597 = vsyncpa [#allocation3], 1 }
 0x350   :  { %599 = vsyncpa [#allocation3 + $0x1], 1 }
 0x351   :  { %600 = vsyncpa [#allocation5], 1 }
 0x352   :  { %602 = vsyncpa [#allocation5 + $0x1], 1 }

</bundles_post_ra>
